<compile_context>
chip_gen: v7x
topology: tpu7x:2x2x1
jax: 0.10.0
libtpu: 0.0.40
codegen_flags: <defaults>
</compile_context>

<pallas_src>
import functools

import jax
import jax.numpy as jnp
import numpy as np
from jax.experimental import pallas as pl
from jax.experimental.pallas import tpu as pltpu


def _channel_attention_kernel(x_ref, av_ref, bv_ref, out_ref, acc_ref, *,
                              hw_total, hw_tile, needs_mask, inv_hw, eps):
    hw_i = pl.program_id(1)

    @pl.when(hw_i == 0)
    def _():
        acc_ref[...] = jnp.zeros_like(acc_ref)

    # --- per-tile spatial partial sum ---------------------------------------
    xb = x_ref[...].astype(jnp.float32)                    # (bt, C, hw_tile)
    if needs_mask:
        lane = jax.lax.broadcasted_iota(jnp.int32, xb.shape, 2)
        xb = jnp.where(hw_i * hw_tile + lane < hw_total, xb, 0.0)
    # Single cross-lane reduce per tile (XLU); accumulator is only (bt, C) f32,
    # so there is no repeated full-width VMEM read-modify-write.
    acc_ref[...] += jnp.sum(xb, axis=2)

    # --- finalize: mean -> GroupNorm(1,C) -> folded qkv(v) -> sigmoid --------
    @pl.when(hw_i == pl.num_programs(1) - 1)
    def _():
        y = acc_ref[...] * inv_hw                          # (bt, C) spatial mean
        mu = jnp.mean(y, axis=1, keepdims=True)
        var = jnp.mean((y - mu) ** 2, axis=1, keepdims=True)  # biased var (PyTorch GN)
        yhat = (y - mu) * jax.lax.rsqrt(var + eps)         # (bt, C)
        # GroupNorm affine + grouped 1x1 conv (v chunk) folded into A_v / b_v.
        v = jnp.dot(yhat, av_ref[...],
                    preferred_element_type=jnp.float32) + bv_ref[...]
        out_ref[...] = jax.nn.sigmoid(v)[:, None, :].astype(out_ref.dtype)


def channel_attention(x, gn_w, gn_b, w_qkv, head_num, window_size=-1):
    """Pallas implementation of ChannelAttention.forward (window_size=-1, drop=0)."""
    if window_size != -1:
        raise NotImplementedError(
            "Only window_size == -1 (AdaptiveAvgPool2d((1,1))) is implemented.")
    B, C, H, W = x.shape
    assert C % head_num == 0
    head_dim = C // head_num
    eps = 1e-5
    HW = H * W

    # Lane-dense layout: (B, C, H*W).  Free reshape for contiguous NCHW.
    x3 = x.reshape(B, C, HW)
    itemsize = jnp.dtype(x.dtype).itemsize
    out_itemsize = itemsize

    # --- host-side folding: GroupNorm affine + grouped 1x1 conv (v chunk) ----
    # qkv output channel j = w_qkv[j] * y[j // 3]; v = channels [2C, 3C).
    cols = jnp.arange(C)
    src = (2 * C + cols) // 3
    gn_w32 = gn_w.astype(jnp.float32)
    gn_b32 = gn_b.astype(jnp.float32)
    w_v = w_qkv.astype(jnp.float32)[2 * C + cols]
    a_v = jnp.zeros((C, C), jnp.float32).at[src, cols].set(w_v * gn_w32[src])
    b_v = (w_v * gn_b32[src]).reshape(1, C)

    # --- chip-aware VMEM budget ----------------------------------------------
    try:
        vmem_phys = int(pltpu.get_tpu_info().vmem_capacity_bytes)
    except Exception:
        vmem_phys = 64 << 20                      # conservative (v7x per-TC)
    if vmem_phys >= (96 << 20):                   # v5e / v6e: 128 MiB physical
        total_target, x_cap_max, limit_cap = 80 << 20, 16 << 20, 100 << 20
    else:                                         # v7x: 64 MiB physical per TC
        total_target, x_cap_max, limit_cap = 48 << 20, 8 << 20, 56 << 20

    av_bytes = 2 * (C * C + C) * 4                # A_v + b_v (double-buffered)
    x_block_cap = min(x_cap_max, max(256 << 10, (total_target - av_bytes) // 2))

    # --- hw tile: grow spatial run first (long contiguous DMA bursts) --------
    if HW * C * itemsize <= x_block_cap or HW < 128:
        hw_tile = HW                              # whole spatial extent per block
    else:
        max_mult = max(1, (x_block_cap // (C * itemsize)) // 128)
        hw_tile = None
        if HW % 128 == 0:
            n128 = HW // 128
            for m in range(min(max_mult, n128), 0, -1):
                if n128 % m == 0:                 # exact division -> no masking
                    hw_tile = m * 128
                    break
        if hw_tile is None:                       # unaligned HW: mask remainder
            hw_tile = max_mult * 128
    grid_hw = -(-HW // hw_tile)
    needs_mask = (HW % hw_tile) != 0

    # --- batch tile: fill leftover budget, keep >= 2 parallel grid steps -----
    per_b_bytes = C * hw_tile * itemsize
    b_cap = max(1, x_block_cap // per_b_bytes)
    if B > 1:
        b_cap = min(b_cap, max(1, B // 2))        # keep both v7x TCs busy
    b_tile = 1
    for d in range(1, B + 1):
        if B % d == 0 and d <= b_cap:
            b_tile = d

    grid = (B // b_tile, grid_hw)

    # --- VMEM limit with headroom --------------------------------------------
    x_block_bytes = b_tile * per_b_bytes
    vmem_need = (2 * x_block_bytes                # double-buffered x
                 + av_bytes                       # A_v / b_v
                 + b_tile * C * 4                 # (bt, C) f32 accumulator
                 + 2 * b_tile * C * out_itemsize) # output block
    vmem_limit = int(min(max(vmem_need + (2 << 20), 16 << 20), limit_cap))
    vmem_limit = max(vmem_limit, vmem_need + (1 << 20))

    kernel = functools.partial(
        _channel_attention_kernel,
        hw_total=HW, hw_tile=hw_tile, needs_mask=needs_mask,
        inv_hw=1.0 / float(HW), eps=eps)

    grid_spec = pltpu.PrefetchScalarGridSpec(
        num_scalar_prefetch=0,
        grid=grid,
        in_specs=[
            pl.BlockSpec((b_tile, C, hw_tile), lambda b, h: (b, 0, h)),  # x, native dtype
            pl.BlockSpec((C, C), lambda b, h: (0, 0)),                   # A_v (folded)
            pl.BlockSpec((1, C), lambda b, h: (0, 0)),                   # b_v (folded)
        ],
        out_specs=pl.BlockSpec((b_tile, 1, C), lambda b, h: (b, 0, 0)),
        scratch_shapes=[pltpu.VMEM((b_tile, C), jnp.float32)],
    )

    cost = pl.CostEstimate(
        flops=int(B * C * HW + 2 * B * C * C),
        transcendentals=int(B * C),
        bytes_accessed=int(B * C * HW * itemsize + (C * C + C) * 4
                           + B * C * out_itemsize),
    )

    out = pl.pallas_call(
        kernel,
        out_shape=jax.ShapeDtypeStruct((B, 1, C), x.dtype),
        grid_spec=grid_spec,
        compiler_params=pltpu.CompilerParams(
            dimension_semantics=("parallel", "arbitrary"),
            vmem_limit_bytes=vmem_limit),
        cost_estimate=cost,
    )(x3, a_v, b_v)

    # (B, 1, C) -> (B, head_num, 1, head_dim)  (same element order as PyTorch rearrange)
    return out.reshape(B, head_num, 1, head_dim)


def channel_attention_ref(x, gn_w, gn_b, w_qkv, head_num):
    """Pure-JAX reference mirroring the full PyTorch forward (window_size=-1, drop=0)."""
    B, C, H, W = x.shape
    head_dim = C // head_num
    y = jnp.mean(x, axis=(2, 3))                                   # AdaptiveAvgPool2d((1,1))
    mu = jnp.mean(y, axis=1, keepdims=True)                        # GroupNorm(1, C)
    var = jnp.mean((y - mu) ** 2, axis=1, keepdims=True)
    yn = (y - mu) / jnp.sqrt(var + 1e-5) * gn_w[None, :] + gn_b[None, :]
    j = jnp.arange(3 * C)
    qkv = w_qkv[None, :] * yn[:, j // 3]                           # grouped 1x1 conv
    q, k, v = qkv[:, :C], qkv[:, C:2 * C], qkv[:, 2 * C:]
    q = q.reshape(B, head_num, 1, head_dim)
    k = k.reshape(B, head_num, 1, head_dim)
    v = v.reshape(B, head_num, 1, head_dim)
    attn = (q @ jnp.swapaxes(k, -2, -1)) * (head_dim ** -0.5)
    attn = jax.nn.softmax(attn, axis=-1)
    out = (attn @ v).mean(axis=2, keepdims=True)
    return jax.nn.sigmoid(out)


if __name__ == "__main__":
    B, C, H, W = 2, 16, 16, 16
    head_num = 4

    key = jax.random.PRNGKey(0)
    k_x, k_gw, k_gb, k_qkv = jax.random.split(key, 4)
    x = jax.random.normal(k_x, (B, C, H, W), jnp.float32)
    # deterministic synthetic parameters (module shapes from __init__)
    gn_w = 1.0 + 0.1 * jax.random.normal(k_gw, (C,), jnp.float32)          # GroupNorm weight
    gn_b = 0.1 * jax.random.normal(k_gb, (C,), jnp.float32)                # GroupNorm bias
    w_qkv = jax.random.normal(k_qkv, (3 * C,), jnp.float32) * 0.5          # Conv2d(dim,3*dim,1,groups=dim)

    out = channel_attention(x, gn_w, gn_b, w_qkv, head_num)
    out = jax.block_until_ready(out)

    ref = channel_attention_ref(x, gn_w, gn_b, w_qkv, head_num)
    np.testing.assert_allclose(np.asarray(out), np.asarray(ref), rtol=1e-5, atol=1e-5)
    assert out.shape == (B, head_num, 1, C // head_num)
    assert out.dtype == x.dtype

    print("KERNEL_OK")
</pallas_src>

<mosaic_0001>
module attributes {stable_mosaic.version = 11 : i64} {
  func.func @_channel_attention_kernel(%arg0: i32, %arg1: i32, %arg2: memref<1x16x256xf32, #tpu.memory_space<vmem>>, %arg3: memref<16x16xf32, #tpu.memory_space<vmem>>, %arg4: memref<1x16xf32, #tpu.memory_space<vmem>>, %arg5: memref<1x1x16xf32, #tpu.memory_space<vmem>>, %arg6: memref<1x16xf32, #tpu.memory_space<vmem>>) attributes {dimension_semantics = [#tpu.dimension_semantics<parallel>, #tpu.dimension_semantics<arbitrary>], iteration_bounds = array<i64: 2, 1>, scalar_prefetch = 0 : i64, scratch_operands = 1 : i64, tpu.core_type = #tpu.core_type<tc>, window_params = [{transform_indices = @transform_0, window_bounds = array<i64: 1, 16, 256>}, {pipeline_mode = #tpu.pipeline_mode<synchronous>, transform_indices = @transform_1, window_bounds = array<i64: 16, 16>}, {pipeline_mode = #tpu.pipeline_mode<synchronous>, transform_indices = @transform_2, window_bounds = array<i64: 1, 16>}, {transform_indices = @transform_3, window_bounds = array<i64: 1, 1, 16>}]} {
    %c0_i32 = arith.constant 0 : i32
    %0 = arith.cmpi eq, %arg1, %c0_i32 : i32
    %1 = arith.extui %0 : i1 to i32
    %c0_i32_0 = arith.constant 0 : i32
    %2 = arith.cmpi ne, %1, %c0_i32_0 : i32
    scf.if %2 {
      %cst_9 = arith.constant 0.000000e+00 : f32
      %11 = vector.broadcast %cst_9 : f32 to vector<1x16xf32>
      %c0_10 = arith.constant 0 : index
      %c0_11 = arith.constant 0 : index
      %12 = vector.load %arg6[%c0_10, %c0_11] : memref<1x16xf32, #tpu.memory_space<vmem>>, vector<1x16xf32>
      tpu.vector_store %arg6[%c0_10, %c0_11], %11 {strides = array<i32>} : memref<1x16xf32, #tpu.memory_space<vmem>>, vector<1x16xf32>,
    } else {
    }
    %c0 = arith.constant 0 : index
    %c0_1 = arith.constant 0 : index
    %c0_2 = arith.constant 0 : index
    %3 = vector.load %arg2[%c0, %c0_1, %c0_2] : memref<1x16x256xf32, #tpu.memory_space<vmem>>, vector<1x16x256xf32>
    %c0_3 = arith.constant 0 : index
    %c0_4 = arith.constant 0 : index
    %4 = vector.load %arg6[%c0_3, %c0_4] : memref<1x16xf32, #tpu.memory_space<vmem>>, vector<1x16xf32>
    %cst = arith.constant dense<0.000000e+00> : vector<1x16xf32>
    %5 = vector.multi_reduction <add>, %3, %cst [2] : vector<1x16x256xf32> to vector<1x16xf32>
    %6 = arith.addf %4, %5 : vector<1x16xf32>
    %c0_5 = arith.constant 0 : index
    %c0_6 = arith.constant 0 : index
    %7 = vector.load %arg6[%c0_5, %c0_6] : memref<1x16xf32, #tpu.memory_space<vmem>>, vector<1x16xf32>
    tpu.vector_store %arg6[%c0_5, %c0_6], %6 {strides = array<i32>} : memref<1x16xf32, #tpu.memory_space<vmem>>, vector<1x16xf32>,
    %c0_i32_7 = arith.constant 0 : i32
    %8 = arith.cmpi eq, %arg1, %c0_i32_7 : i32
    %9 = arith.extui %8 : i1 to i32
    %c0_i32_8 = arith.constant 0 : i32
    %10 = arith.cmpi ne, %9, %c0_i32_8 : i32
    scf.if %10 {
      %c0_9 = arith.constant 0 : index
      %c0_10 = arith.constant 0 : index
      %11 = vector.load %arg6[%c0_9, %c0_10] : memref<1x16xf32, #tpu.memory_space<vmem>>, vector<1x16xf32>
      %cst_11 = arith.constant 3.906250e-03 : f32
      %12 = vector.broadcast %cst_11 : f32 to vector<1x16xf32>
      %13 = arith.mulf %11, %12 : vector<1x16xf32>
      %cst_12 = arith.constant dense<0.000000e+00> : vector<1xf32>
      %14 = vector.multi_reduction <add>, %13, %cst_12 [1] : vector<1x16xf32> to vector<1xf32>
      %15 = vector.shape_cast %14 : vector<1xf32> to vector<1x1xf32>
      %cst_13 = arith.constant 1.600000e+01 : f32
      %16 = vector.broadcast %cst_13 : f32 to vector<1x1xf32>
      %17 = arith.divf %15, %16 : vector<1x1xf32>
      %18 = vector.broadcast %17 : vector<1x1xf32> to vector<1x16xf32>
      %19 = arith.subf %13, %18 : vector<1x16xf32>
      %20 = arith.mulf %19, %19 : vector<1x16xf32>
      %cst_14 = arith.constant dense<0.000000e+00> : vector<1xf32>
      %21 = vector.multi_reduction <add>, %20, %cst_14 [1] : vector<1x16xf32> to vector<1xf32>
      %22 = vector.shape_cast %21 : vector<1xf32> to vector<1x1xf32>
      %cst_15 = arith.constant 1.600000e+01 : f32
      %23 = vector.broadcast %cst_15 : f32 to vector<1x1xf32>
      %24 = arith.divf %22, %23 : vector<1x1xf32>
      %25 = vector.broadcast %17 : vector<1x1xf32> to vector<1x16xf32>
      %26 = arith.subf %13, %25 : vector<1x16xf32>
      %cst_16 = arith.constant 9.99999974E-6 : f32
      %27 = vector.broadcast %cst_16 : f32 to vector<1x1xf32>
      %28 = arith.addf %24, %27 : vector<1x1xf32>
      %29 = math.rsqrt %28 : vector<1x1xf32>
      %30 = vector.broadcast %29 : vector<1x1xf32> to vector<1x16xf32>
      %31 = arith.mulf %26, %30 : vector<1x16xf32>
      %c0_17 = arith.constant 0 : index
      %c0_18 = arith.constant 0 : index
      %32 = vector.load %arg3[%c0_17, %c0_18] : memref<16x16xf32, #tpu.memory_space<vmem>>, vector<16x16xf32>
      %cst_19 = arith.constant dense<0.000000e+00> : vector<1x16xf32>
      %33 = tpu.matmul %31, %32, %cst_19 {dimension_numbers = #tpu.dot_dimension_numbers<[1], [0], [0], [1], [0, 0, 1, 1], [], []>} : vector<1x16xf32>, vector<16x16xf32>, vector<1x16xf32> -> vector<1x16xf32>
      %c0_20 = arith.constant 0 : index
      %c0_21 = arith.constant 0 : index
      %34 = vector.load %arg4[%c0_20, %c0_21] : memref<1x16xf32, #tpu.memory_space<vmem>>, vector<1x16xf32>
      %35 = arith.addf %33, %34 : vector<1x16xf32>
      %36 = arith.negf %35 : vector<1x16xf32>
      %37 = math.exp %36 : vector<1x16xf32>
      %cst_22 = arith.constant 1.000000e+00 : f32
      %38 = vector.broadcast %cst_22 : f32 to vector<1x16xf32>
      %39 = arith.addf %38, %37 : vector<1x16xf32>
      %40 = arith.divf %38, %39 : vector<1x16xf32>
      %41 = vector.shape_cast %40 : vector<1x16xf32> to vector<1x1x16xf32>
      %c0_23 = arith.constant 0 : index
      %c0_24 = arith.constant 0 : index
      %c0_25 = arith.constant 0 : index
      %42 = vector.load %arg5[%c0_23, %c0_24, %c0_25] : memref<1x1x16xf32, #tpu.memory_space<vmem>>, vector<1x1x16xf32>
      tpu.vector_store %arg5[%c0_23, %c0_24, %c0_25], %41 {strides = array<i32>} : memref<1x1x16xf32, #tpu.memory_space<vmem>>, vector<1x1x16xf32>,
    } else {
    }
    return
  }
  func.func @transform_0(%arg0: i32, %arg1: i32) -> (i32, i32, i32) {
    %c0_i32 = arith.constant 0 : i32
    %c0_i32_0 = arith.constant 0 : i32
    return %arg0, %c0_i32, %arg1 : i32, i32, i32
  }
  func.func @transform_1(%arg0: i32, %arg1: i32) -> (i32, i32) {
    %c0_i32 = arith.constant 0 : i32
    %c0_i32_0 = arith.constant 0 : i32
    %c0_i32_1 = arith.constant 0 : i32
    return %c0_i32, %c0_i32_0 : i32, i32
  }
  func.func @transform_2(%arg0: i32, %arg1: i32) -> (i32, i32) {
    %c0_i32 = arith.constant 0 : i32
    %c0_i32_0 = arith.constant 0 : i32
    %c0_i32_1 = arith.constant 0 : i32
    return %c0_i32, %c0_i32_0 : i32, i32
  }
  func.func @transform_3(%arg0: i32, %arg1: i32) -> (i32, i32, i32) {
    %c0_i32 = arith.constant 0 : i32
    %c0_i32_0 = arith.constant 0 : i32
    %c0_i32_1 = arith.constant 0 : i32
    return %arg0, %c0_i32, %c0_i32_0 : i32, i32, i32
  }
}

</mosaic_0001>

<bundles_post_ra>
// kernel: tpu_custom_call.1
= control target key start
LH: loop header
LB: loop body
LE: loop exit
PB: predicated region body
PF: predicated region fallthrough
CT: control target
= control target key end

     0   :  { %8 = vsyncpa [#allocation4], 0  ;;  %s1178_s0 = inlined_call_operand.hbm [shape: f32[2,16,256], index: 0, kind: input, shape index: {}]   ;;  %s1179_s1 = inlined_call_operand.hbm [shape: f32[16,16], index: 1, kind: input, shape index: {}]   ;;  %s1180_s2 = inlined_call_operand.vmem [shape: f32[1,16], index: 2, kind: input, shape index: {}]   ;;  %s1181_s3 = inlined_call_operand.hbm [shape: f32[2,1,16], index: 3, kind: output, shape index: {}]  }
   0x1   :  { %10 = vsyncpa [#allocation4 + $0x1], 0 }
   0x2   :  { %11 = vsyncpa [#allocation7], 0 }
   0x3   :  { %12 = vsyncpa [#allocation5], 0 }
   0x4   :  { %14 = vsyncpa [#allocation5 + $0x1], 0  ;;  %s939_s12 = smov 0   ;;  %s941_s13 = smov 0  }
   0x5   :  { %s943_s14 = smov 0   ;;  %s945_s15 = smov 0  }
   0x6   :  { %s947_s16 = smov 0   ;;  %s949_s17 = smov 0  }
   0x7 LB: > { %s641_s18 = sadd.s32 4294967295, %s905_s17   ;;  %s642_s19 = sadd.s32 4294967294, %s905_s17   ;;  %s905_s17 = sphi %s949_s17, %s20_s17   ;;  %s901_s16 = sphi %s947_s16, %s1205_s16   ;;  %s897_s15 = sphi %s945_s15, %s1204_s15   ;;  %s893_s14 = sphi %s943_s14, %s1203_s14   ;;  %s889_s13 = sphi %s941_s13, %s1202_s13   ;;  %s885_s12 = sphi %s939_s12, %s1201_s12  }
   0x8   : > { %p54_p0 = scmp.ne.s32.totalorder %s889_s13, %s885_s12  ;;  %p973_p1 = scmp.eq.s32.totalorder %s641_s18, 0 }
   0x9   : > { %p977_p2 = scmp.eq.s32.totalorder %s641_s18, 1  ;;  %p126_p3 = scmp.eq.s32.totalorder %s642_s19, 1 }
   0xa   : > { %s1186_s20 = scalar_select %p973_p1, 1, 0 }
   0xb   : > { %s1187_s21 = scalar_select %p977_p2, 1, 0 }
   0xc   : > { %p983_p4 = por %p973_p1, %p54_p0  ;;  %p643_p5 = scmp.ge.s32.totalorder %s905_s17, 1 }
   0xd   : > { %p988_p6 = por %p126_p3, %p54_p0  ;;  %p133_p7 = scmp.lt.s32.totalorder %s905_s17, 3 }
   0xe   : > { %s1188_s22 = scalar_select %p983_p4, 1, 0 }
   0xf   : > { %s1189_s23 = scalar_select %p988_p6, 1, 0 }
  0x10   : > { %p993_p8 = pnand %p643_p5, %p133_p7  ;;  %s907_s25 = smov [#allocation6]  }
  0x11   : > { %s145_s26 = sshll.u32 %s907_s25, 4  ;;  %s32_s28 = sadd.s32 1, %s901_s16  ;;  %s146_s26 = int_to_ptr.vmem [resolvable:$true] %s145_s26 }
  0x12   : > { %s1190_s24 = scalar_select %p993_p8, 1, 0 }
  0x13   : > { %p679_p9 = pneg %p993_p8  ;;  %s761_s4 = scalar_lea.hbm %s1179_s1, 256 }
  0x14   : > { %p762_p12 = scmp.ne.s32.totalorder %s1179_s1, %s761_s4  ;;  %p768_p5 = scmp.lt.u32.totalorder %s761_s4, %s1179_s1 }
  0x15   : > { %p1002_p11 = pnand %p679_p9, %p973_p1 }
  0x17   : > { %p763_p13 = pneg %p1002_p11 }
  0x19   : > { %p764_p0 = pnand %p763_p13, %p762_p12 }
  0x1b   : > { %p765_p3 = pneg %p764_p0 }
  0x1d   : > { %p770_p7 = pnand %p768_p5, %p765_p3 }
  0x1f   : > { %773 = shalt.err (!%p770_p7)
}
  0x20   : > { %s774_s9 = scalar_lea.vmem %s146_s26, 256  ;;  %p782_p1 = scmp.lt.s32.totalorder %s146_s26, %s146_s26 }
  0x21   : > { %p775_p9 = scmp.ne.s32.totalorder %s146_s26, %s774_s9  ;;  %p783_p4 = scmp.lt.s32.totalorder %s774_s9, %s774_s9 }
  0x23   : > { %p777_p10 = pnand %p775_p9, %p763_p13  ;;  %p784_p8 = por %p783_p4, %p782_p1 }
  0x25   : > { %p778_p6 = pneg %p777_p10 }
  0x27   : > { %p785_p2 = pnand %p784_p8, %p778_p6 }
  0x29   : > { %788 = shalt.err (!%p785_p2)
}
  0x2a   : > { %s908_s10 = smov 128   ;;  %s909_s11 = smov 8  }
  0x2b   : > { %682 = dma.hbm_to_vmem [thread:$0]  (!%p1002_p11), %s1179_s1, 256, %s146_s26, [#allocation7], %s908_s10, %s908_s10, %s909_s11  }
  0x2c   : > { %p34_p1 = scmp.ge.s32.totalorder %s32_s28, 2  ;;  %s41_s25 = sadd.s32 1, %s893_s14 }
  0x2d   : > { %p48_p2 = scmp.ne.s32.totalorder %s893_s14, %s889_s13  ;;  %p49_p4 = scmp.eq.s32.totalorder %s905_s17, 0 }
  0x2e   : > { %s1207_s28 = smov (%p34_p1, %s32_s28), 0  ;;  %p1193_p8 = scmp.ne.s32.totalorder %s1187_s21, 0 }
  0x2f   : > { %p1029_p6 = por %p49_p4, %p48_p2  ;;  %s36_s27 = ssub.s32 %s901_s16, %s1207_s28 }
  0x30   : > { %p1035_p10 = por %p1193_p8, %p48_p2  ;;  %p692_p12 = scmp.lt.s32.totalorder %s905_s17, 2 }
  0x31   : > { %p39_p11 = scmp.eq.s32.totalorder %s36_s27, 0  ;;  %s162_s26 = sand.u32 1, %s893_s14  }
  0x32   : > { %s646_s4 = sshll.u32 %s162_s26, 5  ;;  %s657_s6 = sshll.u32 %s901_s16, 9 }
  0x33   : > { %s1044_s5 = scalar_select %p39_p11, %s893_s14, %s41_s25  }
  0x34   : > { %s1050_s9 = scalar_lea.hbm %s1178_s0, %s657_s6  ;;  %s166_s21 = scalar_lea.vmem [#allocation3], %s646_s4 }
  0x35   : > { %s175_s10 = sshll.u32 %s166_s21, 4  ;;  %p1056_p13 = pnand %p692_p12, %p1029_p6  ;;  %s1052_s10 = int_to_ptr.vmem [resolvable:$true] %s175_s10 }
  0x36   : > { %s1060_s18 = scalar_lea.sflag [#allocation4], %s162_s26  ;;  %s789_s19 = scalar_lea.hbm %s1050_s9, 512 }
  0x37   : > { %p790_p0 = scmp.ne.s32.totalorder %s1050_s9, %s789_s19  ;;  %p791_p3 = pneg %p1056_p13 }
  0x38   : > { %s794_s29 = scalar_lea.hbm %s1178_s0, 1024  ;;  %p795_p9 = scmp.lt.u32.totalorder %s1050_s9, %s1178_s0 }
  0x39   : > { %p792_p5 = pnand %p791_p3, %p790_p0  ;;  %p796_p1 = scmp.lt.u32.totalorder %s794_s29, %s789_s19 }
  0x3a   : > { %p798_p4 = scmp.lt.u32.totalorder %s789_s19, %s1050_s9 }
  0x3b   : > { %p793_p7 = pneg %p792_p5  ;;  %p797_p2 = por %p796_p1, %p795_p9 }
  0x3d   : > { %p799_p6 = por %p798_p4, %p797_p2 }
  0x3f   : > { %p800_p8 = pnand %p799_p6, %p793_p7 }
  0x41   : > { %803 = shalt.err (!%p800_p8)
}
  0x42   : > { %s804_s26 = scalar_lea.vmem %s1052_s10, 512  ;;  %s910_s7 = smov [#allocation3]  }
  0x43   : > { %p805_p12 = scmp.ne.s32.totalorder %s1052_s10, %s804_s26  ;;  %s809_s8 = sshll.u32 %s910_s7, 4  ;;  %s810_s8 = int_to_ptr.vmem [resolvable:$false] %s809_s8 }
  0x44   : > { %s811_s21 = scalar_lea.vmem %s810_s8, 1024  ;;  %p812_p5 = scmp.lt.s32.totalorder %s1052_s10, %s810_s8 }
  0x45   : > { %p807_p11 = pnand %p805_p12, %p791_p3  ;;  %p813_p9 = scmp.lt.s32.totalorder %s811_s21, %s804_s26 }
  0x47   : > { %p808_p0 = pneg %p807_p11  ;;  %p814_p1 = por %p813_p9, %p812_p5 }
  0x49   : > { %p815_p2 = pnand %p814_p1, %p808_p0 }
  0x4b   : > { %818 = shalt.err (!%p815_p2)
}
  0x4c   : > { %s911_s19 = smov 256   ;;  %s912_s25 = smov 16  }
  0x4d   : > { %686 = dma.hbm_to_vmem [thread:$0]  (!%p1056_p13), %s1050_s9, 512, %s1052_s10, %s1060_s18, %s911_s19, %s911_s19, %s912_s25  }
  0x4e   : > { %p1196_p3 = scmp.ne.s32.totalorder %s1190_s24, 0 }
  0x4f   : > { %s1091_s27 = sand.u32 (!%p1196_p3), 1, %s889_s13   ;;  %p1197_p7 = scmp.ne.s32.totalorder (!%p1196_p3), %s1188_s22, 0 }
  0x50   : > { %187 = sbr.rel (%p1196_p3) target bundleno = 965 (0x3c5), region = 32  ;;  %s650_s29 = sshll.u32 (!%p1196_p3), %s1091_s27, 5 }
  0x51   : > { %s190_s4 = scalar_lea.sflag (!%p1196_p3), [#allocation4], %s1091_s27  ;;  %s193_s6 = scalar_lea.vmem (!%p1196_p3), [#allocation3], %s650_s29 }
  0x57   : > { %872 = dma.done.wait (%p1197_p7), %s190_s4, 512  }
  0x58   : > { %874 = vsyncadd (%p1197_p7), %s190_s4, 4294966784  ;;  %p1198_p4 = scmp.ne.s32.totalorder %s1186_s20, 0 }
  0x5a   : > { %876 = dma.done.wait (%p1198_p4), [#allocation7], 256  }
  0x5b   : > { %878 = vsyncadd (%p1198_p4), [#allocation7], 4294967040  ;;  %v226_v0 = vld [vmem:[%s193_s6] sm:$0xff]  ;;  %v227_v1 = vld [vmem:[%s193_s6 + $0x8] sm:$0xff]  ;;  %v913_v6 = vmov 0   ;;  %v239_v7 = vlaneseq  ;;  %vm224_vm0 = vcmask 122880  }
  0x5c   : > { %v228_v2 = vld [vmem:[%s193_s6 + $0x10] sm:$0xff]  ;;  %v231_v3 = vadd.f32 %v227_v1, %v226_v0  ;;  %v229_v4 = vld [vmem:[%s193_s6 + $0x18] sm:$0xff]  ;;  %753 = vset.pattern.permute.xlu1 %v913_v6  ;;  %754 = vset.pattern.permute.xlu0 %v913_v6  ;;  %v914_v8 = vmov 1966171168   ;;  %v915_v1 = vmov 0.0   ;;  %vm418_vm1 = vcmask 130112  }
  0x5d   : > { %v234_v5 = vadd.f32 %v229_v4, %v228_v2  ;;  %v308_v9 = vunpack.c.l.s4 %v914_v8  ;;  %v1103_v10 = vshrl.u32 %v239_v7, 7  ;;  %225 = vst.msk [vmem:[#allocation2] sm:$0x1] %vm224_vm0, %v915_v1  ;;  %v408_v2 = vand.u32 127, %v239_v7  ;;  %s654_s24 = sshll.u32 %s897_s15, 4  ;;  %s218_s9 = scalar_lea.vmem [#allocation8], %s1091_s27 }
  0x5e   : > { %232 = vadd.xlane.f32.xlu0 %v231_v3  ;;  %vm917_vm2 = vmmov 0   ;;  %vm460_vm3 = vcmask 130048   ;;  %s554_s10 = sshll.u32 %s218_s9, 4  ;;  %s1128_s26 = scalar_lea.hbm %s1181_s3, %s654_s24  ;;  %s1130_s10 = int_to_ptr.vmem [resolvable:$true] %s554_s10 }
  0x5f   : > { %v309_v11 = vunpack.c.0.s8 %v308_v9  ;;  %v241_v12 = vsub.s32 0, %v1103_v10  ;;  %v245_v13 = vsub.s32 1, %v1103_v10  ;;  %v249_v14 = vsub.s32 2, %v1103_v10  ;;  %665 = vmatprep.mubr.msk.f32.mxu0 %vm917_vm2, %v915_v1  ;;  %s542_s7 = scalar_lea.sflag [#allocation5], %s1091_s27  ;;  %s819_s8 = scalar_lea.vmem %s1130_s10, 16 }
  0x60   : > { %v253_v15 = vsub.s32 3, %v1103_v10  ;;  %v257_v16 = vsub.s32 4, %v1103_v10  ;;  %v261_v17 = vsub.s32 5, %v1103_v10  ;;  %v265_v18 = vsub.s32 6, %v1103_v10  ;;  %p820_p13 = scmp.ne.s32.totalorder %s1130_s10, %s819_s8  ;;  %s918_s15 = smov [#allocation8]  }
  0x61   : > { %v269_v19 = vsub.s32 7, %v1103_v10  ;;  %v312_v21 = vsub.s32 %v309_v11, %v1103_v10  ;;  %v413_v3 = vadd.s32 4294967288, %v408_v2  ;;  %s823_s21 = sshll.u32 %s918_s15, 4  ;;  %s824_s21 = int_to_ptr.vmem [resolvable:$false] %s823_s21 }
  0x62   : > { %235 = vadd.xlane.f32.xlu0 %v234_v5  ;;  %v411_v5 = vsub.s32 %v408_v2, %v1103_v10  ;;  %p821_p6 = pnand %p820_p13, %p1035_p10  ;;  %s825_s19 = scalar_lea.vmem %s824_s21, 32 }
  0x63   : > { %v416_v6 = vsub.s32 %v413_v3, %v1103_v10  ;;  %p826_p12 = scmp.lt.s32.totalorder %s1130_s10, %s824_s21  ;;  %p827_p11 = scmp.lt.s32.totalorder %s825_s19, %s819_s8 }
  0x64   : > { %p822_p8 = pneg %p821_p6 }
  0x65   : > { %p828_p0 = por %p827_p11, %p826_p12 }
  0x67   : > { %p829_p5 = pnand %p828_p0, %p822_p8 }
  0xeb   : > { %v233_v20 = vpop.xlane.xlu0 %232 }
  0xec   : > { %v242_v22 = vrot.slane %v233_v20, %v241_v12  ;;  %v246_v23 = vrot.slane %v233_v20, %v245_v13  ;;  %v250_v24 = vrot.slane %v233_v20, %v249_v14  ;;  %v254_v25 = vrot.slane %v233_v20, %v253_v15 }
  0xed   : > { %v258_v26 = vrot.slane %v233_v20, %v257_v16  ;;  %v262_v27 = vrot.slane %v233_v20, %v261_v17  ;;  %v266_v28 = vrot.slane %v233_v20, %v265_v18  ;;  %v270_v29 = vrot.slane %v233_v20, %v269_v19 }
  0xee   : > { %v303_v30 = vcombine.low %v242_v22, %v246_v23  ;;  %v304_v31 = vcombine.low %v250_v24, %v254_v25  ;;  %v457_v24 = vld [vmem:[#allocation6] sm:$0xff]  ;;  %v458_v25 = vld [vmem:[#allocation6 + $0x8] sm:$0xff] }
  0xef   : > { %v236_v32 = vpop.xlane.xlu0 %235  ;;  %v305_v33 = vcombine.low %v258_v26, %v262_v27  ;;  %v306_v34 = vcombine.low %v266_v28, %v270_v29  ;;  %v916_v26 = vmov 0.0|0.0  }
  0xf0   : > { %v313_v35 = vrot.slane %v303_v30, %v312_v21  ;;  %v320_v36 = vrot.slane %v304_v31, %v312_v21  ;;  %v274_v37 = vrot.slane %v236_v32, %v241_v12  ;;  %v278_v38 = vrot.slane %v236_v32, %v245_v13  ;;  %668 = vmatprep.subr.bf16.mxu0 %v916_v26 }
  0xf1   : > { %v327_v39 = vrot.slane %v305_v33, %v312_v21  ;;  %v334_v40 = vrot.slane %v306_v34, %v312_v21  ;;  %v282_v41 = vrot.slane %v236_v32, %v249_v14  ;;  %v286_v42 = vrot.slane %v236_v32, %v253_v15  ;;  %v230_v14 = vld [vmem:[#allocation2] sm:$0x1] }
  0xf2   : > { %v335_v43 = vcombine.low %v313_v35, %v320_v36  ;;  %v290_v44 = vrot.slane %v236_v32, %v257_v16  ;;  %v294_v45 = vrot.slane %v236_v32, %v261_v17  ;;  %v298_v46 = vrot.slane %v236_v32, %v265_v18 }
  0xf3   : > { %v336_v47 = vcombine.low %v327_v39, %v334_v40  ;;  %v302_v48 = vrot.slane %v236_v32, %v269_v19  ;;  %v352_v49 = vcombine.low %v274_v37, %v278_v38  ;;  %v353_v50 = vcombine.low %v282_v41, %v286_v42  ;;  %v459_v32 = vld [vmem:[%s1180_s2] sm:$0x1] }
  0xf4   : > { %v343_v51 = vrot.slane %v335_v43, %v312_v21  ;;  %v354_v52 = vcombine.low %v290_v44, %v294_v45 }
  0xf5   : > { %v350_v53 = vrot.slane %v336_v47, %v312_v21  ;;  %v355_v54 = vcombine.low %v298_v46, %v302_v48  ;;  %v362_v55 = vrot.slane %v352_v49, %v312_v21  ;;  %v369_v56 = vrot.slane %v353_v50, %v312_v21 }
  0xf6   : > { %v376_v57 = vrot.slane %v354_v52, %v312_v21 }
  0xf7   : > { %v351_v58 = vcombine.low %v343_v51, %v350_v53  ;;  %v383_v59 = vrot.slane %v355_v54, %v312_v21  ;;  %v384_v60 = vcombine.low %v362_v55, %v369_v56 }
  0xf9   : > { %402 = vperm.xlu1 %753, %v351_v58   ;;  %v385_v61 = vcombine.low %v376_v57, %v383_v59  ;;  %v392_v62 = vrot.slane %v384_v60, %v312_v21 }
  0xfb   : > { %v399_v63 = vrot.slane %v385_v61, %v312_v21 }
  0xfd   : > { %v400_v0 = vcombine.low %v392_v62, %v399_v63 }
  0xff   : > { %405 = vperm.xlu1 %753, %v400_v0  }
 0x178   : > { %v403_v4 = vpop.permute.xlu1 %402 }
 0x179   : > { %v412_v9 = vrot.slane %v403_v4, %v411_v5 }
 0x17e   : > { %v406_v8 = vpop.permute.xlu1 %405 }
 0x17f   : > { %v417_v11 = vrot.slane %v406_v8, %v416_v6 }
 0x181   : > { %v419_v12 = vsel %vm418_vm1, %v417_v11, %v412_v9 }
 0x182   : > { %v426_v13 = vrot.slane %v419_v12, %v312_v21 }
 0x184   : > { %v433_v15 = vrot.slane %v426_v13, %v312_v21  ;;  %v669_v21 = vpack.c.bf16 %v458_v25, %v457_v24 }
 0x186   : > { %v435_v16 = vadd.f32 %v433_v15, %v230_v14  ;;  %670 = vmatpush3.bf16.msra.mxu0 %v669_v21 }
 0x188   : > { %437 = vst.msk [vmem:[#allocation2] sm:$0x1] %vm224_vm0, %v435_v16 }
 0x18f   : > { %v441_v17 = vld [vmem:[#allocation2] sm:$0x1] }
 0x190   : > { %v442_v18 = vmul.f32 0.00390625, %v441_v17 }
 0x192   : > { %v443_v7 = vsel %vm224_vm0, %v442_v18, 0.0 }
 0x193   : > { %444 = vadd.xlane.f32.xlu0 %v443_v7 }
 0x220   : > { %v445_v19 = vpop.xlane.xlu0 %444 }
 0x221   : > { %v447_v20 = vmul.f32 0.0625, %v445_v19 }
 0x223   : > { %v448_v22 = vsub.f32 %v442_v18, %v447_v20 }
 0x225   : > { %v449_v10 = vmul.f32 %v448_v22, %v448_v22 }
 0x227   : > { %v450_v23 = vsel %vm224_vm0, %v449_v10, 0.0 }
 0x228   : > { %451 = vadd.xlane.f32.xlu1 %v450_v23 }
 0x2b5   : > { %v452_v27 = vpop.xlane.xlu1 %451 }
 0x2b6   : > { %v453_v28 = vmul.f32 0.0625, %v452_v27 }
 0x2b8   : > { %v454_v29 = vadd.f32 1e-05, %v453_v28 }
 0x2ba   : > { %755 = vrsqrt.f32 %v454_v29 }
 0x2c4   : > { %v756_v30 = vpop.eup %755 }
 0x2c5   : > { %v456_v31 = vmul.f32 %v756_v30, %v448_v22 }
 0x2c7   : > { %666 = vmatmul.mubr.msk.f32.vlgmr.msra.gmra.mrb[0].mxu0 %vm460_vm3, %v456_v31 }
 0x39a   : > { %v530_v33 = vpop.f32.mrb[0].mxu0 }
 0x39b   : > { %v531_v34 = vadd.f32 %v530_v33, %v459_v32  ;;  %v667_v35 = vpop.f32.mrb[1].mxu0 }
 0x39d   : > { %v653_v36 = vmul.f32 -1.442695, %v531_v34 }
 0x39f   : > { %757 = vpow2.f32 %v653_v36 }
 0x3a9   : > { %v758_v37 = vpop.eup %757 }
 0x3aa   : > { %v537_v38 = vadd.f32 1.0, %v758_v37 }
 0x3ac   : > { %759 = vrcp.f32 %v537_v38 }
 0x3b6   : > { %v760_v39 = vpop.eup %759 }
 0x3b7   : > { %540 = vst.msk [vmem:[%s218_s9] sm:$0x1] %vm224_vm0, %v760_v39 }
 0x3b8   : > { %832 = shalt.err (!%p829_p5)
}
 0x3b9   : > { %s833_s25 = scalar_lea.hbm %s1128_s26, 16  ;;  %s837_s4 = scalar_lea.hbm %s1181_s3, 32 }
 0x3ba   : > { %p834_p9 = scmp.ne.s32.totalorder %s1128_s26, %s833_s25  ;;  %p838_p3 = scmp.lt.u32.totalorder %s1128_s26, %s1181_s3 }
 0x3bb   : > { %p839_p7 = scmp.lt.u32.totalorder %s837_s4, %s833_s25  ;;  %p841_p13 = scmp.lt.u32.totalorder %s833_s25, %s1128_s26 }
 0x3bc   : > { %p835_p1 = pnand %p834_p9, %p1035_p10 }
 0x3bd   : > { %p840_p4 = por %p839_p7, %p838_p3 }
 0x3be   : > { %p836_p2 = pneg %p835_p1 }
 0x3bf   : > { %p842_p6 = por %p841_p13, %p840_p4 }
 0x3c1   : > { %p843_p8 = pnand %p842_p6, %p836_p2 }
 0x3c3   : > { %846 = shalt.err (!%p843_p8)
}
 0x3c4   : > { %677 = dma.vmem_to_hbm [thread:$0]  (%p1035_p10), %s1130_s10, 16, %s1128_s26, %s542_s7  }
 0x3c5 PF: > { %s566_s22 = sand.u32 1, %s885_s12   ;;  %p1199_p12 = scmp.ne.s32.totalorder %s1189_s23, 0 }
 0x3c6   : > { %p1200_p11 = scmp.ge.s32.totalorder %s905_s17, 2  ;;  %s567_s24 = scalar_lea.sflag [#allocation5], %s566_s22 }
 0x3c8   : > { %p688_p0 = pnand %p1200_p11, %p1199_p12 }
 0x3ca   : > { %880 = dma.done.wait (!%p688_p0), %s567_s24, 16  }
 0x3cb   : > { %882 = vsyncadd (!%p688_p0), %s567_s24, 4294967280  ;;  %s20_s17 = sadd.s32 1, %s905_s17   ;;  %s1201_s12 = smov %s889_s13 }
 0x3cc   : > { %p17_p5 = scmp.ge.s32.totalorder %s20_s17, 4   ;;  %s1202_s13 = smov %s893_s14 }
 0x3cd   : > { %s1203_s14 = smov %s1044_s5  ;;  %s1204_s15 = smov %s901_s16 }
 0x3ce   : > { %s1205_s16 = smov %s1207_s28  ;;  %19 = sbr.rel (!%p17_p5) target bundleno = 7 (0x7), region = 89 }
 0x3d5   :  { %571 = vsyncpa [#allocation4], 1 }
 0x3d6   :  { %573 = vsyncpa [#allocation4 + $0x1], 1 }
 0x3d7   :  { %574 = vsyncpa [#allocation7], 1 }
 0x3d8   :  { %575 = vsyncpa [#allocation5], 1 }
 0x3d9   :  { %577 = vsyncpa [#allocation5 + $0x1], 1 }

</bundles_post_ra>
